<compile_context>
chip_gen: v5e
topology: v5e:2x2
jax: 0.10.0
libtpu: 0.0.40
codegen_flags: <defaults>
</compile_context>

<pallas_src>
import functools
from collections import namedtuple

import jax
import jax.numpy as jnp
from jax.experimental import pallas as pl
from jax.experimental.pallas import tpu as pltpu


LayerMeta = namedtuple("LayerMeta", "k d pad lin lout lp")

CPAD = 128  # lane width; channels are padded to this


def _round_up(x, m):
    return ((x + m - 1) // m) * m


# ----------------------------- fused Pallas kernel ---------------------------


def _tcn_kernel(x_ref, *refs, meta, rv, osize):
    """Fused TCN forward for ONE batch element (grid is over batch).

    refs = (w_0, b_0, ..., w_{n-1}, b_{n-1}, lw, lb, o_ref, pbuf)

      w_l : (K, 128, 128)   effective conv weight, tap-major; rows >= Cin_l
                            and cols >= Cout_l are zero.
      b_l : (1, 128)        bias, zero-padded channels.
      lw  : (128, O)        final linear weight (transposed, zero-padded rows).
      lb  : (1, O)
      o_ref: (1, 1, O)      kernel output block for this batch element.
      pbuf: (Lp, 128)       zero-padded activation buffer (f32 VMEM scratch).
    """
    n = len(meta)
    w_refs = refs[0:2 * n:2]
    b_refs = refs[1:2 * n:2]
    lw_ref = refs[2 * n]
    lb_ref = refs[2 * n + 1]
    o_ref = refs[2 * n + 2]
    pbuf = refs[2 * n + 3]

    f32 = jnp.float32

    # ---- stage layer-0 input: zero pad rows, copy data (already 128-lane) ---
    m0 = meta[0]
    if m0.pad:
        pbuf[0:m0.pad, :] = jnp.zeros((m0.pad, CPAD), f32)
    pbuf[m0.pad:m0.pad + m0.lin, :] = x_ref[0]
    if m0.pad:
        pbuf[m0.pad + m0.lin:m0.lp, :] = jnp.zeros((m0.pad, CPAD), f32)

    acc = None
    for li, m in enumerate(meta):
        # ---- dilated conv as K accumulating matmuls (no gather buffer) ------
        # out[t] = sum_j pbuf[t + j*d] @ w_j   (pbuf is symmetric-zero-padded)
        acc = jnp.dot(pbuf[pl.ds(0, rv), :], w_refs[li][0],
                      preferred_element_type=f32)
        for j in range(1, m.k):
            acc = acc + jnp.dot(pbuf[pl.ds(j * m.d, rv), :], w_refs[li][j],
                                preferred_element_type=f32)
        # bias + ReLU; padded channels: 0 + 0 -> relu -> 0.
        acc = jnp.maximum(acc + b_refs[li][...], 0.0)
        # TODO(synk): nn.Dropout(p=0.2) is identity in eval mode; not applied.

        # ---- restage in place for the next layer: zero ONLY the pad rows ----
        if li + 1 < n:
            nm = meta[li + 1]
            if nm.pad:
                pbuf[0:nm.pad, :] = jnp.zeros((nm.pad, CPAD), f32)
            pbuf[nm.pad:nm.pad + nm.lin, :] = acc[0:nm.lin, :]
            if nm.pad:
                pbuf[nm.pad + nm.lin:nm.lp, :] = jnp.zeros((nm.pad, CPAD), f32)

    # ---- final Linear on the single last-timestep row (y[:, :, -1]) --------
    m = meta[-1]
    y_last = acc[m.lout - 1:m.lout, :]                       # (1, 128)
    out = jnp.dot(y_last, lw_ref[...], preferred_element_type=f32) + lb_ref[...]
    o_ref[...] = out.reshape(1, 1, osize).astype(o_ref.dtype)


# ----------------------------- parameter prep (hoisted) ----------------------


def _effective_weight(v, g):
    # weight_norm: w = g * v / ||v||, norm over (in_ch, kernel) per out channel
    norm = jnp.sqrt(jnp.sum(v * v, axis=(1, 2), keepdims=True))
    return (g[:, None, None] / norm) * v                      # (Cout, Cin, K)


def prepare_params(conv_params, linear_params, kernel_size):
    """One-time prep: weight-norm, tap-major layout, 128-lane zero padding."""
    prep_conv = []
    for (v, g, b) in conv_params:
        w = _effective_weight(v, g)                           # (Cout, Cin, K)
        cout, cin, k = w.shape
        assert k == kernel_size and cin <= CPAD and cout <= CPAD
        w_k = jnp.transpose(w, (2, 1, 0))                     # (K, Cin, Cout)
        w3 = jnp.zeros((k, CPAD, CPAD), jnp.float32).at[:, :cin, :cout].set(w_k)
        b_pad = jnp.zeros((1, CPAD), jnp.float32).at[0, :cout].set(b)
        prep_conv.append((w3, b_pad))
    lw, lb = linear_params                                    # (O, C), (O,)
    o_size, c_last = lw.shape
    lw_pad = jnp.zeros((CPAD, o_size), jnp.float32).at[:c_last, :].set(lw.T)
    return prep_conv, (lw_pad, lb.reshape(1, -1))


# ----------------------------- forward wrapper --------------------------------


def tcn_forward(x, prep_conv, prep_linear, kernel_size):
    """x: (B, seq_len, input_size) -> (B, output_size). Eval-mode forward."""
    B, L, cin0 = x.shape
    n_layers = len(prep_conv)
    lw_pad, lb = prep_linear
    out_size = lw_pad.shape[1]

    # Static per-layer geometry (Conv1d with symmetric padding, no chomp:
    # length grows by (K-1)*d per layer — matches the PyTorch module).
    metas = []
    lin = L
    for i in range(n_layers):
        d = 2 ** i
        pad = (kernel_size - 1) * d
        lout = lin + pad
        metas.append(LayerMeta(k=kernel_size, d=d, pad=pad,
                               lin=lin, lout=lout, lp=lin + 2 * pad))
        lin = lout

    rv = _round_up(metas[-1].lout, 8)            # rows per matmul (8-aligned)
    pmax = _round_up(metas[-1].pad, 8)
    lp_max = rv + pmax                           # scratch rows (covers all lp)

    # Pad channels to 128 lanes once so the in-kernel staging store is a
    # single full-lane copy (tiny XLA pad, outside the kernel hot loop).
    xp = jnp.zeros((B, L, CPAD), jnp.float32).at[:, :, :cin0].set(
        x.astype(jnp.float32))

    kernel = functools.partial(_tcn_kernel, meta=tuple(metas), rv=rv,
                               osize=out_size)

    flat_inputs = [xp]
    in_specs = [pl.BlockSpec((1, L, CPAD), lambda b: (b, 0, 0))]
    for (w3, b_pad) in prep_conv:
        flat_inputs += [w3, b_pad]
        in_specs += [pl.BlockSpec(w3.shape, lambda b: (0, 0, 0)),
                     pl.BlockSpec(b_pad.shape, lambda b: (0, 0))]
    flat_inputs += [lw_pad, lb]
    in_specs += [pl.BlockSpec(lw_pad.shape, lambda b: (0, 0)),
                 pl.BlockSpec(lb.shape, lambda b: (0, 0))]

    # Actual VMEM footprint (+ headroom) so realistic shapes don't hit the
    # default 16/32 MiB scoped limit; capped below v7x's 64 MiB physical.
    f = 4
    footprint = (lp_max * CPAD * f                                  # pbuf
                 + 2 * (L * CPAD * f                                # x block
                        + n_layers * (kernel_size * CPAD * CPAD + CPAD) * f
                        + CPAD * out_size * f + out_size * f)
                 + 3 * rv * CPAD * f                                # acc temps
                 + out_size * f)
    vmem_limit = int(min(56 << 20, max(footprint + (2 << 20), 4 << 20)))

    out = pl.pallas_call(
        kernel,
        grid=(B,),
        out_shape=jax.ShapeDtypeStruct((B, 1, out_size), x.dtype),
        in_specs=in_specs,
        out_specs=pl.BlockSpec((1, 1, out_size), lambda b: (b, 0, 0)),
        scratch_shapes=[
            pltpu.VMEM((lp_max, CPAD), jnp.float32),   # activation buffer
        ],
        compiler_params=pltpu.CompilerParams(
            dimension_semantics=("parallel",),
            vmem_limit_bytes=vmem_limit),
    )(*flat_inputs)
    return out.reshape(B, out_size)


# ----------------------------- params & reference -----------------------------


def init_params(key, input_size, output_size, num_channels, kernel_size):
    """Deterministic synthetic parameters matching the module's shapes."""
    conv_params = []
    in_ch = input_size
    for out_ch in num_channels:
        key, k1, k2 = jax.random.split(key, 3)
        v = 0.3 * jax.random.normal(k1, (out_ch, in_ch, kernel_size), jnp.float32)
        g = jnp.sqrt(jnp.sum(v * v, axis=(1, 2)))             # weight_norm init
        b = 0.1 * jax.random.normal(k2, (out_ch,), jnp.float32)
        conv_params.append((v, g, b))
        in_ch = out_ch
    key, k1, k2 = jax.random.split(key, 3)
    lw = 0.3 * jax.random.normal(k1, (output_size, in_ch), jnp.float32)
    lb = 0.1 * jax.random.normal(k2, (output_size,), jnp.float32)
    return conv_params, (lw, lb)


def tcn_reference(x, conv_params, linear_params, kernel_size):
    """Pure-JAX reference mirroring the PyTorch forward (NCL layout)."""
    y = jnp.transpose(x, (0, 2, 1))                           # x.transpose(1, 2)
    for i, (v, g, b) in enumerate(conv_params):
        d = 2 ** i
        w = _effective_weight(v, g)
        pad = (kernel_size - 1) * d
        y = jax.lax.conv_general_dilated(
            y, w, window_strides=(1,), padding=[(pad, pad)],
            rhs_dilation=(d,), dimension_numbers=("NCH", "OIH", "NCH"))
        y = jnp.maximum(y + b[None, :, None], 0.0)
    y_last = y[:, :, -1]
    lw, lb = linear_params
    return y_last @ lw.T + lb


# ----------------------------- main -------------------------------------------

if __name__ == "__main__":
    # x: (batch, seq_len, input_size) as consumed by TCNModel.forward
    batch, seq_len, input_size = 2, 8, 4
    num_channels = (8, 8)
    kernel_size = 2
    output_size = 3

    key = jax.random.PRNGKey(0)
    key, kx = jax.random.split(key)
    x = jax.random.normal(kx, (batch, seq_len, input_size), jnp.float32)

    conv_params, linear_params = init_params(
        key, input_size, output_size, num_channels, kernel_size)

    # Hoisted, one-time weight preparation (weight-norm, layout, padding, lw.T).
    prep_conv, prep_linear = prepare_params(conv_params, linear_params, kernel_size)

    out = tcn_forward(x, prep_conv, prep_linear, kernel_size)
    out = jax.block_until_ready(out)

    ref = tcn_reference(x, conv_params, linear_params, kernel_size)
    ref = jax.block_until_ready(ref)

    assert out.shape == (batch, output_size), out.shape
    max_err = float(jnp.max(jnp.abs(out - ref)))
    assert max_err < 1e-2, f"mismatch vs reference: {max_err}"

    print("KERNEL_OK")
</pallas_src>

<mosaic_0001>
module attributes {stable_mosaic.version = 11 : i64} {
  func.func @_tcn_kernel(%arg0: i32, %arg1: memref<1x8x128xf32, #tpu.memory_space<vmem>>, %arg2: memref<2x128x128xf32, #tpu.memory_space<vmem>>, %arg3: memref<1x128xf32, #tpu.memory_space<vmem>>, %arg4: memref<2x128x128xf32, #tpu.memory_space<vmem>>, %arg5: memref<1x128xf32, #tpu.memory_space<vmem>>, %arg6: memref<128x3xf32, #tpu.memory_space<vmem>>, %arg7: memref<1x3xf32, #tpu.memory_space<vmem>>, %arg8: memref<1x1x3xf32, #tpu.memory_space<vmem>>, %arg9: memref<24x128xf32, #tpu.memory_space<vmem>>) attributes {dimension_semantics = [#tpu.dimension_semantics<parallel>], iteration_bounds = array<i64: 2>, scalar_prefetch = 0 : i64, scratch_operands = 1 : i64, tpu.core_type = #tpu.core_type<tc>, window_params = [{transform_indices = @transform_0, window_bounds = array<i64: 1, 8, 128>}, {pipeline_mode = #tpu.pipeline_mode<synchronous>, transform_indices = @transform_1, window_bounds = array<i64: 2, 128, 128>}, {pipeline_mode = #tpu.pipeline_mode<synchronous>, transform_indices = @transform_2, window_bounds = array<i64: 1, 128>}, {pipeline_mode = #tpu.pipeline_mode<synchronous>, transform_indices = @transform_3, window_bounds = array<i64: 2, 128, 128>}, {pipeline_mode = #tpu.pipeline_mode<synchronous>, transform_indices = @transform_4, window_bounds = array<i64: 1, 128>}, {pipeline_mode = #tpu.pipeline_mode<synchronous>, transform_indices = @transform_5, window_bounds = array<i64: 128, 3>}, {pipeline_mode = #tpu.pipeline_mode<synchronous>, transform_indices = @transform_6, window_bounds = array<i64: 1, 3>}, {transform_indices = @transform_7, window_bounds = array<i64: 1, 1, 3>}]} {
    %cst = arith.constant 0.000000e+00 : f32
    %0 = vector.broadcast %cst : f32 to vector<1x128xf32>
    %c0 = arith.constant 0 : index
    %c0_0 = arith.constant 0 : index
    %1 = vector.load %arg9[%c0, %c0_0] : memref<24x128xf32, #tpu.memory_space<vmem>>, vector<1x128xf32>
    tpu.vector_store %arg9[%c0, %c0_0], %0 {strides = array<i32>} : memref<24x128xf32, #tpu.memory_space<vmem>>, vector<1x128xf32>,
    %c0_1 = arith.constant 0 : index
    %c0_2 = arith.constant 0 : index
    %c0_3 = arith.constant 0 : index
    %2 = vector.load %arg1[%c0_1, %c0_2, %c0_3] : memref<1x8x128xf32, #tpu.memory_space<vmem>>, vector<1x8x128xf32>
    %3 = vector.shape_cast %2 : vector<1x8x128xf32> to vector<8x128xf32>
    %c1 = arith.constant 1 : index
    %c0_4 = arith.constant 0 : index
    %4 = vector.load %arg9[%c1, %c0_4] : memref<24x128xf32, #tpu.memory_space<vmem>>, vector<8x128xf32>
    tpu.vector_store %arg9[%c1, %c0_4], %3 {strides = array<i32>} : memref<24x128xf32, #tpu.memory_space<vmem>>, vector<8x128xf32>,
    %cst_5 = arith.constant 0.000000e+00 : f32
    %5 = vector.broadcast %cst_5 : f32 to vector<1x128xf32>
    %c9 = arith.constant 9 : index
    %c0_6 = arith.constant 0 : index
    %6 = vector.load %arg9[%c9, %c0_6] : memref<24x128xf32, #tpu.memory_space<vmem>>, vector<1x128xf32>
    tpu.vector_store %arg9[%c9, %c0_6], %5 {strides = array<i32>} : memref<24x128xf32, #tpu.memory_space<vmem>>, vector<1x128xf32>,
    %c0_7 = arith.constant 0 : index
    %c0_8 = arith.constant 0 : index
    %7 = vector.load %arg9[%c0_7, %c0_8] : memref<24x128xf32, #tpu.memory_space<vmem>>, vector<16x128xf32>
    %c0_9 = arith.constant 0 : index
    %c0_10 = arith.constant 0 : index
    %c0_11 = arith.constant 0 : index
    %8 = vector.load %arg2[%c0_9, %c0_10, %c0_11] : memref<2x128x128xf32, #tpu.memory_space<vmem>>, vector<1x128x128xf32>
    %9 = vector.shape_cast %8 : vector<1x128x128xf32> to vector<128x128xf32>
    %cst_12 = arith.constant dense<0.000000e+00> : vector<16x128xf32>
    %10 = tpu.matmul %7, %9, %cst_12 {dimension_numbers = #tpu.dot_dimension_numbers<[1], [0], [0], [1], [0, 0, 1, 1], [], []>} : vector<16x128xf32>, vector<128x128xf32>, vector<16x128xf32> -> vector<16x128xf32>
    %c1_13 = arith.constant 1 : index
    %c0_14 = arith.constant 0 : index
    %11 = vector.load %arg9[%c1_13, %c0_14] : memref<24x128xf32, #tpu.memory_space<vmem>>, vector<16x128xf32>
    %c1_15 = arith.constant 1 : index
    %c0_16 = arith.constant 0 : index
    %c0_17 = arith.constant 0 : index
    %12 = vector.load %arg2[%c1_15, %c0_16, %c0_17] : memref<2x128x128xf32, #tpu.memory_space<vmem>>, vector<1x128x128xf32>
    %13 = vector.shape_cast %12 : vector<1x128x128xf32> to vector<128x128xf32>
    %cst_18 = arith.constant dense<0.000000e+00> : vector<16x128xf32>
    %14 = tpu.matmul %11, %13, %cst_18 {dimension_numbers = #tpu.dot_dimension_numbers<[1], [0], [0], [1], [0, 0, 1, 1], [], []>} : vector<16x128xf32>, vector<128x128xf32>, vector<16x128xf32> -> vector<16x128xf32>
    %15 = arith.addf %10, %14 : vector<16x128xf32>
    %c0_19 = arith.constant 0 : index
    %c0_20 = arith.constant 0 : index
    %16 = vector.load %arg3[%c0_19, %c0_20] : memref<1x128xf32, #tpu.memory_space<vmem>>, vector<1x128xf32>
    %17 = vector.broadcast %16 : vector<1x128xf32> to vector<16x128xf32>
    %18 = arith.addf %15, %17 : vector<16x128xf32>
    %cst_21 = arith.constant 0.000000e+00 : f32
    %19 = vector.broadcast %cst_21 : f32 to vector<16x128xf32>
    %20 = arith.maximumf %18, %19 : vector<16x128xf32>
    %cst_22 = arith.constant 0.000000e+00 : f32
    %21 = vector.broadcast %cst_22 : f32 to vector<2x128xf32>
    %c0_23 = arith.constant 0 : index
    %c0_24 = arith.constant 0 : index
    %22 = vector.load %arg9[%c0_23, %c0_24] : memref<24x128xf32, #tpu.memory_space<vmem>>, vector<2x128xf32>
    tpu.vector_store %arg9[%c0_23, %c0_24], %21 {strides = array<i32>} : memref<24x128xf32, #tpu.memory_space<vmem>>, vector<2x128xf32>,
    %23 = vector.extract_strided_slice %20 {offsets = [0, 0], sizes = [9, 128], strides = [1, 1]} : vector<16x128xf32> to vector<9x128xf32>
    %c2 = arith.constant 2 : index
    %c0_25 = arith.constant 0 : index
    %24 = vector.load %arg9[%c2, %c0_25] : memref<24x128xf32, #tpu.memory_space<vmem>>, vector<9x128xf32>
    tpu.vector_store %arg9[%c2, %c0_25], %23 {strides = array<i32>} : memref<24x128xf32, #tpu.memory_space<vmem>>, vector<9x128xf32>,
    %cst_26 = arith.constant 0.000000e+00 : f32
    %25 = vector.broadcast %cst_26 : f32 to vector<2x128xf32>
    %c11 = arith.constant 11 : index
    %c0_27 = arith.constant 0 : index
    %26 = vector.load %arg9[%c11, %c0_27] : memref<24x128xf32, #tpu.memory_space<vmem>>, vector<2x128xf32>
    tpu.vector_store %arg9[%c11, %c0_27], %25 {strides = array<i32>} : memref<24x128xf32, #tpu.memory_space<vmem>>, vector<2x128xf32>,
    %c0_28 = arith.constant 0 : index
    %c0_29 = arith.constant 0 : index
    %27 = vector.load %arg9[%c0_28, %c0_29] : memref<24x128xf32, #tpu.memory_space<vmem>>, vector<16x128xf32>
    %c0_30 = arith.constant 0 : index
    %c0_31 = arith.constant 0 : index
    %c0_32 = arith.constant 0 : index
    %28 = vector.load %arg4[%c0_30, %c0_31, %c0_32] : memref<2x128x128xf32, #tpu.memory_space<vmem>>, vector<1x128x128xf32>
    %29 = vector.shape_cast %28 : vector<1x128x128xf32> to vector<128x128xf32>
    %cst_33 = arith.constant dense<0.000000e+00> : vector<16x128xf32>
    %30 = tpu.matmul %27, %29, %cst_33 {dimension_numbers = #tpu.dot_dimension_numbers<[1], [0], [0], [1], [0, 0, 1, 1], [], []>} : vector<16x128xf32>, vector<128x128xf32>, vector<16x128xf32> -> vector<16x128xf32>
    %c2_34 = arith.constant 2 : index
    %c0_35 = arith.constant 0 : index
    %31 = vector.load %arg9[%c2_34, %c0_35] : memref<24x128xf32, #tpu.memory_space<vmem>>, vector<16x128xf32>
    %c1_36 = arith.constant 1 : index
    %c0_37 = arith.constant 0 : index
    %c0_38 = arith.constant 0 : index
    %32 = vector.load %arg4[%c1_36, %c0_37, %c0_38] : memref<2x128x128xf32, #tpu.memory_space<vmem>>, vector<1x128x128xf32>
    %33 = vector.shape_cast %32 : vector<1x128x128xf32> to vector<128x128xf32>
    %cst_39 = arith.constant dense<0.000000e+00> : vector<16x128xf32>
    %34 = tpu.matmul %31, %33, %cst_39 {dimension_numbers = #tpu.dot_dimension_numbers<[1], [0], [0], [1], [0, 0, 1, 1], [], []>} : vector<16x128xf32>, vector<128x128xf32>, vector<16x128xf32> -> vector<16x128xf32>
    %35 = arith.addf %30, %34 : vector<16x128xf32>
    %c0_40 = arith.constant 0 : index
    %c0_41 = arith.constant 0 : index
    %36 = vector.load %arg5[%c0_40, %c0_41] : memref<1x128xf32, #tpu.memory_space<vmem>>, vector<1x128xf32>
    %37 = vector.broadcast %36 : vector<1x128xf32> to vector<16x128xf32>
    %38 = arith.addf %35, %37 : vector<16x128xf32>
    %cst_42 = arith.constant 0.000000e+00 : f32
    %39 = vector.broadcast %cst_42 : f32 to vector<16x128xf32>
    %40 = arith.maximumf %38, %39 : vector<16x128xf32>
    %41 = vector.extract_strided_slice %40 {offsets = [10, 0], sizes = [1, 128], strides = [1, 1]} : vector<16x128xf32> to vector<1x128xf32>
    %c0_43 = arith.constant 0 : index
    %c0_44 = arith.constant 0 : index
    %42 = vector.load %arg6[%c0_43, %c0_44] : memref<128x3xf32, #tpu.memory_space<vmem>>, vector<128x3xf32>
    %cst_45 = arith.constant dense<0.000000e+00> : vector<1x3xf32>
    %43 = tpu.matmul %41, %42, %cst_45 {dimension_numbers = #tpu.dot_dimension_numbers<[1], [0], [0], [1], [0, 0, 1, 1], [], []>} : vector<1x128xf32>, vector<128x3xf32>, vector<1x3xf32> -> vector<1x3xf32>
    %c0_46 = arith.constant 0 : index
    %c0_47 = arith.constant 0 : index
    %44 = vector.load %arg7[%c0_46, %c0_47] : memref<1x3xf32, #tpu.memory_space<vmem>>, vector<1x3xf32>
    %45 = arith.addf %43, %44 : vector<1x3xf32>
    %46 = vector.shape_cast %45 : vector<1x3xf32> to vector<1x1x3xf32>
    %c0_48 = arith.constant 0 : index
    %c0_49 = arith.constant 0 : index
    %c0_50 = arith.constant 0 : index
    %47 = vector.load %arg8[%c0_48, %c0_49, %c0_50] : memref<1x1x3xf32, #tpu.memory_space<vmem>>, vector<1x1x3xf32>
    tpu.vector_store %arg8[%c0_48, %c0_49, %c0_50], %46 {strides = array<i32>} : memref<1x1x3xf32, #tpu.memory_space<vmem>>, vector<1x1x3xf32>,
    return
  }
  func.func @transform_0(%arg0: i32) -> (i32, i32, i32) {
    %c0_i32 = arith.constant 0 : i32
    %c0_i32_0 = arith.constant 0 : i32
    %c0_i32_1 = arith.constant 0 : i32
    return %arg0, %c0_i32, %c0_i32_0 : i32, i32, i32
  }
  func.func @transform_1(%arg0: i32) -> (i32, i32, i32) {
    %c0_i32 = arith.constant 0 : i32
    %c0_i32_0 = arith.constant 0 : i32
    %c0_i32_1 = arith.constant 0 : i32
    %c0_i32_2 = arith.constant 0 : i32
    return %c0_i32, %c0_i32_0, %c0_i32_1 : i32, i32, i32
  }
  func.func @transform_2(%arg0: i32) -> (i32, i32) {
    %c0_i32 = arith.constant 0 : i32
    %c0_i32_0 = arith.constant 0 : i32
    %c0_i32_1 = arith.constant 0 : i32
    return %c0_i32, %c0_i32_0 : i32, i32
  }
  func.func @transform_3(%arg0: i32) -> (i32, i32, i32) {
    %c0_i32 = arith.constant 0 : i32
    %c0_i32_0 = arith.constant 0 : i32
    %c0_i32_1 = arith.constant 0 : i32
    %c0_i32_2 = arith.constant 0 : i32
    return %c0_i32, %c0_i32_0, %c0_i32_1 : i32, i32, i32
  }
  func.func @transform_4(%arg0: i32) -> (i32, i32) {
    %c0_i32 = arith.constant 0 : i32
    %c0_i32_0 = arith.constant 0 : i32
    %c0_i32_1 = arith.constant 0 : i32
    return %c0_i32, %c0_i32_0 : i32, i32
  }
  func.func @transform_5(%arg0: i32) -> (i32, i32) {
    %c0_i32 = arith.constant 0 : i32
    %c0_i32_0 = arith.constant 0 : i32
    %c0_i32_1 = arith.constant 0 : i32
    return %c0_i32, %c0_i32_0 : i32, i32
  }
  func.func @transform_6(%arg0: i32) -> (i32, i32) {
    %c0_i32 = arith.constant 0 : i32
    %c0_i32_0 = arith.constant 0 : i32
    %c0_i32_1 = arith.constant 0 : i32
    return %c0_i32, %c0_i32_0 : i32, i32
  }
  func.func @transform_7(%arg0: i32) -> (i32, i32, i32) {
    %c0_i32 = arith.constant 0 : i32
    %c0_i32_0 = arith.constant 0 : i32
    %c0_i32_1 = arith.constant 0 : i32
    return %arg0, %c0_i32, %c0_i32_0 : i32, i32, i32
  }
}

</mosaic_0001>

<bundles_post_ra>
// kernel: tpu_custom_call.1
= control target key start
LH: loop header
LB: loop body
LE: loop exit
PB: predicated region body
PF: predicated region fallthrough
CT: control target
= control target key end

     0   :  { %12 = vsyncpa [#allocation4], 0  ;;  %s1053_s0 = inlined_call_operand.vmem [shape: f32[2,8,128], index: 0, kind: input, shape index: {}]   ;;  %s1054_s1 = inlined_call_operand.hbm [shape: f32[2,128,128], index: 1, kind: input, shape index: {}]   ;;  %s1055_s2 = inlined_call_operand.vmem [shape: f32[1,128], index: 2, kind: input, shape index: {}]   ;;  %s1056_s3 = inlined_call_operand.hbm [shape: f32[2,128,128], index: 3, kind: input, shape index: {}]   ;;  %s1057_s4 = inlined_call_operand.vmem [shape: f32[1,128], index: 4, kind: input, shape index: {}]   ;;  %s1058_s5 = inlined_call_operand.vmem [shape: f32[128,3], index: 5, kind: input, shape index: {}]   ;;  %s1059_s6 = inlined_call_operand.vmem [shape: f32[1,3], index: 6, kind: input, shape index: {}]   ;;  %s1060_s7 = inlined_call_operand.hbm [shape: f32[2,1,3], index: 7, kind: output, shape index: {}]  }
   0x1   :  { %13 = vsyncpa [#allocation7], 0 }
   0x2   :  { %14 = vsyncpa [#allocation5], 0 }
   0x3   :  { %16 = vsyncpa [#allocation5 + $0x1], 0  ;;  %s878_s24 = smov 0   ;;  %s880_s25 = smov 0  }
   0x4   :  { %s882_s26 = smov 0   ;;  %s884_s27 = smov 0  }
   0x5 LB: > { %s899_s28 = sadd.s32 4294967295, %s831_s27   ;;  %s625_s29 = sadd.s32 4294967294, %s831_s27   ;;  %s831_s27 = sphi %s884_s27, %s1067_s27   ;;  %s827_s26 = sphi %s882_s26, %s1066_s26   ;;  %s823_s25 = sphi %s880_s25, %s1065_s25   ;;  %s819_s24 = sphi %s878_s24, %s1064_s24  }
   0x6   : > { %s903_s30 = sadd.s32 1, %s831_s27   ;;  %s181_s8 = sadd.s32 1, %s827_s26 }
   0x7   : > { %s178_s9 = ssub.s32 %s831_s27, %s903_s30  ;;  %p191_p0 = scmp.ne.s32.totalorder %s827_s26, %s823_s25 }
   0x8   : > { %p179_p1 = scmp.eq.s32.totalorder %s178_s9, 0  ;;  %p192_p2 = scmp.eq.s32.totalorder %s899_s28, 1 }
   0x9   : > { %p197_p3 = scmp.ne.s32.totalorder %s823_s25, %s819_s24  ;;  %p198_p4 = scmp.eq.s32.totalorder %s625_s29, 1 }
   0xa   : > { %s914_s10 = scalar_select %p179_p1, %s827_s26, %s181_s8  }
   0xb   : > { %p916_p5 = por %p192_p2, %p191_p0  ;;  %p920_p6 = por %p198_p4, %p197_p3 }
   0xc   : > { %p626_p7 = scmp.ge.s32.totalorder %s831_s27, 1  ;;  %p205_p8 = scmp.lt.s32.totalorder %s831_s27, 3 }
   0xd   : > { %p657_p9 = scmp.eq.s32.totalorder %s899_s28, 0  ;;  %s216_s16 = sshll.u32 %s1054_s1, 4  ;;  %s217_s16 = int_to_ptr.hbm [resolvable:$true] %s216_s16 }
   0xe   : > { %p927_p10 = pnand %p626_p7, %p205_p8  ;;  %s833_s17 = smov [#allocation3]  }
   0xf   : > { %s218_s18 = sshll.u32 %s833_s17, 4  ;;  %s233_s21 = sshll.u32 %s1056_s3, 4  ;;  %s219_s18 = int_to_ptr.vmem [resolvable:$true] %s218_s18  ;;  %s234_s21 = int_to_ptr.hbm [resolvable:$true] %s233_s21 }
  0x10   : > { %p646_p11 = pneg %p927_p10  ;;  %s834_s22 = smov 128  }
  0x11   : > { %s835_s23 = smov 8   ;;  %s836_s29 = smov [#allocation6]  }
  0x12   : > { %p647_p12 = pnand %p657_p9, %p646_p11  ;;  %s235_s8 = sshll.u32 %s836_s29, 4  ;;  %s236_s8 = int_to_ptr.vmem [resolvable:$true] %s235_s8 }
  0x13   : > { %267 = sbr.rel (%p927_p10) target bundleno = 480 (0x1e0), region = 48 }
  0x14   : > { %649 = dma.hbm_to_vmem [thread:$0]  (!%p647_p12), %s217_s16, 4096, %s219_s18, [#allocation4], %s834_s22, %s834_s22, %s835_s23  }
  0x15   : > { %652 = dma.hbm_to_vmem [thread:$0]  (!%p647_p12), %s234_s21, 4096, %s236_s8, [#allocation7], %s834_s22, %s834_s22, %s835_s23  }
  0x18   : > { %806 = dma.done.wait (%p657_p9), [#allocation4], 4096  }
  0x19   : > { %808 = vsyncadd (%p657_p9), [#allocation4], 4294963200 }
  0x1a   : > { %810 = dma.done.wait (%p657_p9), [#allocation7], 4096  }
  0x1b   : > { %812 = vsyncadd (%p657_p9), [#allocation7], 4294963200  ;;  %v837_v0 = vmov 0.0   ;;  %p303_p13 = scmp.lt.s32.totalorder %s899_s28, 1  ;;  %v347_v1 = vld [vmem:[#allocation3 + $0xf8] sm:$0xff]  ;;  %v346_v3 = vld [vmem:[#allocation3 + $0xf0] sm:$0xff]  ;;  %s544_s14 = scalar_lea.hbm %s1060_s7, %s899_s28 }
  0x1c   : > { %307 = vst [vmem:[#allocation2] sm:$0x1] %v837_v0  ;;  %v328_v2 = vld [vmem:[#allocation3 + $0x78] sm:$0xff]  ;;  %348 = vmatpush.msra.mxu0 %v347_v1  ;;  %v327_v4 = vld [vmem:[#allocation3 + $0x70] sm:$0xff]  ;;  %v345_v5 = vld [vmem:[#allocation3 + $0xe8] sm:$0xff]  ;;  %s301_s8 = sand.u32 1, %s823_s25  }
  0x1d   : > { %310 = vst [vmem:[#allocation2 + $0x9] sm:$0x1] %v837_v0  ;;  %s304_s9 = scalar_select %p303_p13, %s899_s28, 1  ;;  %371 = vmatpush.msra.mxu1 %v328_v2  ;;  %v326_v6 = vld [vmem:[#allocation3 + $0x68] sm:$0xff]  ;;  %v344_v7 = vld [vmem:[#allocation3 + $0xe0] sm:$0xff]  ;;  %v343_v9 = vld [vmem:[#allocation3 + $0xd8] sm:$0xff] }
  0x1e   : > { %349 = vmatpush.msra.mxu0 %v346_v3  ;;  %v325_v8 = vld [vmem:[#allocation3 + $0x60] sm:$0xff]  ;;  %v324_v10 = vld [vmem:[#allocation3 + $0x58] sm:$0xff]  ;;  %v342_v11 = vld [vmem:[#allocation3 + $0xd0] sm:$0xff]  ;;  %s302_s17 = scalar_lea.vmem [#allocation8], %s301_s8  ;;  %s548_s19 = sshll.u32 %s544_s14, 4  ;;  %vm533_vm0 = vcmask 16384   ;;  %s549_s19 = int_to_ptr.hbm [resolvable:$true] %s548_s19 }
  0x1f   : > { %372 = vmatpush.msra.mxu1 %v327_v4  ;;  %s633_s13 = sshll.u32 %s304_s9, 3  ;;  %v323_v12 = vld [vmem:[#allocation3 + $0x50] sm:$0xff]  ;;  %v341_v13 = vld [vmem:[#allocation3 + $0xc8] sm:$0xff]  ;;  %v340_v16 = vld [vmem:[#allocation3 + $0xc0] sm:$0xff]  ;;  %s546_s18 = sshll.u32 %s302_s17, 4  ;;  %s547_s18 = int_to_ptr.vmem [resolvable:$true] %s546_s18 }
  0x20   : > { %350 = vmatpush.msra.mxu0 %v345_v5  ;;  %s306_s16 = scalar_lea.vmem %s1053_s0, %s633_s13  ;;  %v322_v14 = vld [vmem:[#allocation3 + $0x48] sm:$0xff]  ;;  %v442_v17 = vld [vmem:[#allocation6 + $0xf8] sm:$0xff]  ;;  %v321_v19 = vld [vmem:[#allocation3 + $0x40] sm:$0xff]  ;;  %s536_s20 = scalar_lea.sflag [#allocation5], %s301_s8 }
  0x21   : > { %373 = vmatpush.msra.mxu1 %v326_v6  ;;  %v958_v15 = vld [vmem:[%s306_s16] sm:$0xff]  ;;  %v423_v18 = vld [vmem:[#allocation6 + $0x78] sm:$0xff]  ;;  %443 = vmatpush.msra.mxu2 %v442_v17  ;;  %v441_v20 = vld [vmem:[#allocation6 + $0xf0] sm:$0xff]  ;;  %s775_s21 = sshra.s32 %s549_s19, 4  ;;  %s781_s29 = scalar_lea.hbm %s1060_s7, 2  ;;  %s776_s21 = int_to_ptr.hbm [resolvable:$true] %s775_s21 }
  0x22   : > { %351 = vmatpush.msra.mxu0 %v344_v7  ;;  %309 = vst [vmem:[#allocation2 + $0x1] sm:$0xff] %v958_v15  ;;  %465 = vmatpush.msra.mxu3 %v423_v18  ;;  %v422_v21 = vld [vmem:[#allocation6 + $0x70] sm:$0xff]  ;;  %v440_v22 = vld [vmem:[#allocation6 + $0xe8] sm:$0xff]  ;;  %v339_v24 = vld [vmem:[#allocation3 + $0xb8] sm:$0xff]  ;;  %s777_s22 = scalar_lea.hbm %s776_s21, 1  ;;  %p782_p3 = scmp.lt.s32.totalorder %s776_s21, %s1060_s7 }
  0x23   : > { %374 = vmatpush.msra.mxu1 %v325_v8  ;;  %v421_v23 = vld [vmem:[#allocation6 + $0x68] sm:$0xff]  ;;  %v320_v25 = vld [vmem:[#allocation3 + $0x38] sm:$0xff]  ;;  %444 = vmatpush.msra.mxu2 %v441_v20  ;;  %v338_v26 = vld [vmem:[#allocation3 + $0xb0] sm:$0xff]  ;;  %p778_p0 = scmp.ne.s32.totalorder %s776_s21, %s777_s22  ;;  %p783_p4 = scmp.lt.s32.totalorder %s781_s29, %s777_s22 }
  0x24   : > { %352 = vmatpush.msra.mxu0 %v343_v9  ;;  %466 = vmatpush.msra.mxu3 %v422_v21  ;;  %v439_v27 = vld [vmem:[#allocation6 + $0xe0] sm:$0xff]  ;;  %v319_v29 = vld [vmem:[#allocation3 + $0x30] sm:$0xff]  ;;  %v337_v30 = vld [vmem:[#allocation3 + $0xa8] sm:$0xff] }
  0x25   : > { %375 = vmatpush.msra.mxu1 %v324_v10  ;;  %v420_v28 = vld [vmem:[#allocation6 + $0x60] sm:$0xff]  ;;  %445 = vmatpush.msra.mxu2 %v440_v22  ;;  %v438_v31 = vld [vmem:[#allocation6 + $0xd8] sm:$0xff]  ;;  %v318_v33 = vld [vmem:[#allocation3 + $0x28] sm:$0xff]  ;;  %p779_p1 = pnand %p778_p0, %p916_p5  ;;  %p784_p7 = por %p783_p4, %p782_p3 }
  0x26   : > { %353 = vmatpush.msra.mxu0 %v342_v11  ;;  %467 = vmatpush.msra.mxu3 %v421_v23  ;;  %v419_v32 = vld [vmem:[#allocation6 + $0x58] sm:$0xff]  ;;  %v437_v37 = vld [vmem:[#allocation6 + $0xd0] sm:$0xff]  ;;  %v336_v39 = vld [vmem:[#allocation3 + $0xa0] sm:$0xff] }
  0x27   : > { %376 = vmatpush.msra.mxu1 %v323_v12  ;;  %v330_v35 = vld [vmem:[#allocation2 + $0x9] sm:$0xff]  ;;  %446 = vmatpush.msra.mxu2 %v439_v27  ;;  %v317_v40 = vld [vmem:[#allocation3 + $0x20] sm:$0xff]  ;;  %v436_v41 = vld [vmem:[#allocation6 + $0xc8] sm:$0xff]  ;;  %p780_p2 = pneg %p779_p1 }
  0x28   : > { %354 = vmatpush.msra.mxu0 %v341_v13  ;;  %468 = vmatpush.msra.mxu3 %v420_v28  ;;  %v418_v38 = vld [vmem:[#allocation6 + $0x50] sm:$0xff]  ;;  %v417_v42 = vld [vmem:[#allocation6 + $0x48] sm:$0xff]  ;;  %v335_v43 = vld [vmem:[#allocation3 + $0x98] sm:$0xff] }
  0x29   : > { %377 = vmatpush.msra.mxu1 %v322_v14  ;;  %v311_v34 = vld [vmem:[#allocation2] sm:$0xff]  ;;  %v312_v36 = vld [vmem:[#allocation2 + $0x8] sm:$0xff]  ;;  %447 = vmatpush.msra.mxu2 %v438_v31  ;;  %v316_v44 = vld [vmem:[#allocation3 + $0x18] sm:$0xff]  ;;  %p785_p8 = pnand %p784_p7, %p780_p2 }
  0x2a   : > { %355 = vmatpush.msra.mxu0 %v340_v16  ;;  %402 = vst [vmem:[#allocation2] sm:$0x3] %v837_v0  ;;  %469 = vmatpush.msra.mxu3 %v419_v32  ;;  %v435_v45 = vld [vmem:[#allocation6 + $0xc0] sm:$0xff]  ;;  %v334_v47 = vld [vmem:[#allocation3 + $0x90] sm:$0xff]  ;;  %v333_v49 = vld [vmem:[#allocation3 + $0x88] sm:$0xff] }
  0x2b   : > { %378 = vmatpush.msra.mxu1 %v321_v19  ;;  %405 = vst [vmem:[#allocation2 + $0xb] sm:$0x3] %v837_v0  ;;  %448 = vmatpush.msra.mxu2 %v437_v37  ;;  %v416_v46 = vld [vmem:[#allocation6 + $0x40] sm:$0xff]  ;;  %v315_v48 = vld [vmem:[#allocation3 + $0x10] sm:$0xff]  ;;  %v314_v50 = vld [vmem:[#allocation3 + $0x8] sm:$0xff] }
  0x2c   : > { %356 = vmatpush.msra.mxu0 %v339_v24  ;;  %470 = vmatpush.msra.mxu3 %v418_v38  ;;  %v332_v51 = vld [vmem:[#allocation3 + $0x80] sm:$0xff]  ;;  %v434_v53 = vld [vmem:[#allocation6 + $0xb8] sm:$0xff]  ;;  %v433_v54 = vld [vmem:[#allocation6 + $0xb0] sm:$0xff] }
  0x2d   : > { %379 = vmatpush.msra.mxu1 %v320_v25  ;;  %449 = vmatpush.msra.mxu2 %v436_v41  ;;  %v313_v52 = vld [vmem:[#allocation3] sm:$0xff]  ;;  %v432_v55 = vld [vmem:[#allocation6 + $0xa8] sm:$0xff]  ;;  %v415_v57 = vld [vmem:[#allocation6 + $0x38] sm:$0xff] }
  0x2e   : > { %357 = vmatpush.msra.mxu0 %v338_v26  ;;  %471 = vmatpush.msra.mxu3 %v417_v42  ;;  %v431_v56 = vld [vmem:[#allocation6 + $0xa0] sm:$0xff]  ;;  %v430_v58 = vld [vmem:[#allocation6 + $0x98] sm:$0xff]  ;;  %v414_v59 = vld [vmem:[#allocation6 + $0x30] sm:$0xff] }
  0x2f   : > { %380 = vmatpush.msra.mxu1 %v319_v29  ;;  %450 = vmatpush.msra.mxu2 %v435_v45  ;;  %v429_v60 = vld [vmem:[#allocation6 + $0x90] sm:$0xff]  ;;  %v413_v61 = vld [vmem:[#allocation6 + $0x28] sm:$0xff]  ;;  %v412_v63 = vld [vmem:[#allocation6 + $0x20] sm:$0xff] }
  0x30   : > { %358 = vmatpush.msra.mxu0 %v337_v30  ;;  %472 = vmatpush.msra.mxu3 %v416_v46  ;;  %v428_v62 = vld [vmem:[#allocation6 + $0x88] sm:$0xff]  ;;  %v427_v0 = vld [vmem:[#allocation6 + $0x80] sm:$0xff]  ;;  %v411_v1 = vld [vmem:[#allocation6 + $0x18] sm:$0xff] }
  0x31   : > { %381 = vmatpush.msra.mxu1 %v318_v33  ;;  %451 = vmatpush.msra.mxu2 %v434_v53  ;;  %v410_v2 = vld [vmem:[#allocation6 + $0x10] sm:$0xff]  ;;  %v409_v3 = vld [vmem:[#allocation6 + $0x8] sm:$0xff]  ;;  %v408_v4 = vld [vmem:[#allocation6] sm:$0xff] }
  0x32   : > { %359 = vmatpush.msra.mxu0 %v336_v39  ;;  %473 = vmatpush.msra.mxu3 %v415_v57  ;;  %v508_v5 = vld [vmem:[%s1058_s5 + $0x78] sm:$0xff]  ;;  %v507_v6 = vld [vmem:[%s1058_s5 + $0x70] sm:$0xff]  ;;  %v506_v7 = vld [vmem:[%s1058_s5 + $0x68] sm:$0xff] }
  0x33   : > { %382 = vmatpush.msra.mxu1 %v317_v40  ;;  %452 = vmatpush.msra.mxu2 %v433_v54  ;;  %v505_v8 = vld [vmem:[%s1058_s5 + $0x60] sm:$0xff]  ;;  %v504_v9 = vld [vmem:[%s1058_s5 + $0x58] sm:$0xff]  ;;  %v503_v11 = vld [vmem:[%s1058_s5 + $0x50] sm:$0xff] }
  0x34   : > { %360 = vmatpush.msra.mxu0 %v335_v43  ;;  %474 = vmatpush.msra.mxu3 %v414_v59  ;;  %v699_v10 = vld [vmem:[%s1055_s2] ss:$0 sm:$0xff]  ;;  %v500_v27 = vld [vmem:[%s1058_s5 + $0x38] sm:$0xff]  ;;  %v499_v28 = vld [vmem:[%s1058_s5 + $0x30] sm:$0xff] }
  0x35   : > { %383 = vmatpush.msra.mxu1 %v316_v44  ;;  %453 = vmatpush.msra.mxu2 %v432_v55  ;;  %v501_v26 = vld [vmem:[%s1058_s5 + $0x40] sm:$0xff]  ;;  %v498_v29 = vld [vmem:[%s1058_s5 + $0x28] sm:$0xff]  ;;  %v496_v31 = vld [vmem:[%s1058_s5 + $0x18] sm:$0xff] }
  0x36   : > { %361 = vmatpush.msra.mxu0 %v334_v47  ;;  %475 = vmatpush.msra.mxu3 %v413_v61  ;;  %v497_v30 = vld [vmem:[%s1058_s5 + $0x20] sm:$0xff]  ;;  %v495_v32 = vld [vmem:[%s1058_s5 + $0x10] sm:$0xff]  ;;  %v494_v33 = vld [vmem:[%s1058_s5 + $0x8] sm:$0xff] }
  0x37   : > { %384 = vmatpush.msra.mxu1 %v315_v48  ;;  %454 = vmatpush.msra.mxu2 %v431_v56  ;;  %v700_v37 = vld [vmem:[%s1057_s4] ss:$0 sm:$0xff] }
  0x38   : > { %362 = vmatpush.msra.mxu0 %v333_v49  ;;  %476 = vmatpush.msra.mxu3 %v412_v63  ;;  %v509_v44 = vld [vmem:[%s1059_s6] sm:$0x1] }
  0x39   : > { %385 = vmatpush.msra.mxu1 %v314_v50  ;;  %455 = vmatpush.msra.mxu2 %v430_v58 }
  0x3a   : > { %363 = vmatpush.msra.mxu0 %v332_v51  ;;  %477 = vmatpush.msra.mxu3 %v411_v1 }
  0x3b   : > { %386 = vmatpush.msra.mxu1 %v313_v52  ;;  %364 = vmatmul.f32.vlgmr.msra.gmra.mxu0 %v958_v15  ;;  %v502_v15 = vld [vmem:[%s1058_s5 + $0x48] sm:$0xff] }
  0x3c   : > { %387 = vmatmul.f32.vlgmr.msra.gmra.mxu1 %v311_v34  ;;  %456 = vmatpush.msra.mxu2 %v429_v60  ;;  %v493_v34 = vld [vmem:[%s1058_s5] sm:$0xff] }
  0x3d   : > { %478 = vmatpush.msra.mxu3 %v410_v2  ;;  %513 = vmatpush.msrb.mxu0 %v508_v5 }
  0x3e   : > { %457 = vmatpush.msra.mxu2 %v428_v62 }
  0x3f   : > { %479 = vmatpush.msra.mxu3 %v409_v3  ;;  %514 = vmatpush.msrb.mxu0 %v507_v6 }
  0x40   : > { %458 = vmatpush.msra.mxu2 %v427_v0 }
  0x41   : > { %480 = vmatpush.msra.mxu3 %v408_v4  ;;  %515 = vmatpush.msrb.mxu0 %v506_v7 }
  0x43   : > { %367 = vmatmul.f32.gmra.mxu0 %v330_v35 }
  0x44   : > { %390 = vmatmul.f32.gmra.mxu1 %v312_v36  ;;  %516 = vmatpush.msrb.mxu0 %v505_v8 }
  0x46   : > { %517 = vmatpush.msrb.mxu0 %v504_v9 }
  0x48   : > { %518 = vmatpush.msrb.mxu0 %v503_v11 }
  0x4a   : > { %519 = vmatpush.msrb.mxu0 %v502_v15 }
  0x4c   : > { %520 = vmatpush.msrb.mxu0 %v501_v26 }
  0x4e   : > { %521 = vmatpush.msrb.mxu0 %v500_v27 }
  0x50   : > { %522 = vmatpush.msrb.mxu0 %v499_v28 }
  0x52   : > { %523 = vmatpush.msrb.mxu0 %v498_v29 }
  0x54   : > { %524 = vmatpush.msrb.mxu0 %v497_v30 }
  0x56   : > { %525 = vmatpush.msrb.mxu0 %v496_v31 }
  0x58   : > { %526 = vmatpush.msrb.mxu0 %v495_v32 }
  0x5a   : > { %527 = vmatpush.msrb.mxu0 %v494_v33 }
  0x5c   : > { %528 = vmatpush.msrb.mxu0 %v493_v34 }
  0xb8   : > { %v365_v12 = vpop.f32.mrf.mxu0 }
  0xb9   : > { %v388_v13 = vpop.f32.mrf.mxu1 }
  0xba   : > { %v389_v14 = vadd.f32 %v388_v13, %v365_v12 }
  0xbc   : > { %v398_v16 = vadd.f32 %v699_v10, %v389_v14 }
  0xbe   : > { %v400_v17 = vmax.f32 %v398_v16, 0.0 }
  0xc0   : > { %403 = vst [vmem:[#allocation2 + $0x2] sm:$0xff] %v400_v17  ;;  %459 = vmatmul.f32.vlgmr.msra.gmra.mxu2 %v400_v17  ;;  %v368_v18 = vpop.f32.mrf.mxu0 }
  0xc1   : > { %v391_v19 = vpop.f32.mrf.mxu1 }
  0xc2   : > { %v392_v20 = vadd.f32 %v391_v19, %v368_v18 }
  0xc4   : > { %v399_v21 = vadd.f32 %v699_v10, %v392_v20 }
  0xc6   : > { %v401_v22 = vmax.f32 %v399_v21, 0.0 }
  0xc7   : > { %v406_v23 = vld [vmem:[#allocation2] sm:$0xff] }
  0xc8   : > { %404 = vst [vmem:[#allocation2 + $0xa] sm:$0x1] %v401_v22  ;;  %481 = vmatmul.f32.vlgmr.msra.gmra.mxu3 %v406_v23 }
  0xcf   : > { %v425_v24 = vld [vmem:[#allocation2 + $0xa] sm:$0xff] }
  0xd0   : > { %v407_v25 = vld [vmem:[#allocation2 + $0x8] sm:$0xff]  ;;  %461 = vmatmul.f32.gmra.mxu2 %v425_v24 }
  0xd1   : > { %483 = vmatmul.f32.gmra.mxu3 %v407_v25 }
 0x143   : > { %v460_v35 = vpop.f32.mrf.mxu2 }
 0x14b   : > { %v482_v36 = vpop.f32.mrf.mxu3 }
 0x153   : > { %v462_v38 = vpop.f32.mrf.mxu2 }
 0x154   : > { %v484_v39 = vpop.f32.mrf.mxu3 }
 0x155   : > { %v485_v40 = vadd.f32 %v484_v39, %v462_v38 }
 0x157   : > { %v491_v41 = vadd.f32 %v700_v37, %v485_v40 }
 0x159   : > { %v492_v42 = vmax.f32 %v491_v41, 0.0 }
 0x15b   : > { %v511_v43 = vrot.slane %v492_v42, 2 }
 0x15d   : > { %529 = vmatmul.f32.vlgmr.msrb.gmra.mxu0 %v511_v43 }
 0x1da   : > { %v530_v45 = vpop.f32.mrf.mxu0 }
 0x1db   : > { %v531_v46 = vadd.f32 %v530_v45, %v509_v44 }
 0x1dd   : > { %534 = vst.msk [vmem:[%s302_s17] sm:$0x1] %vm533_vm0, %v531_v46 }
 0x1de   : > { %788 = shalt.err (!%p785_p8)
}
 0x1df   : > { %644 = dma.vmem_to_hbm [thread:$0]  (%p916_p5), %s547_s18, 16, %s549_s19, %s536_s20  }
 0x1e0 PF: > { %p661_p9 = scmp.ge.s32.totalorder %s831_s27, 2  ;;  %s560_s8 = sand.u32 1, %s819_s24  }
 0x1e1   : > { %s561_s14 = scalar_lea.sflag [#allocation5], %s560_s8 }
 0x1e2   : > { %p654_p10 = pnand %p661_p9, %p920_p6 }
 0x1e4   : > { %p655_p11 = pneg %p654_p10 }
 0x1e6   : > { %814 = dma.done.wait (%p655_p11), %s561_s14, 16  }
 0x1e7   : > { %816 = vsyncadd (%p655_p11), %s561_s14, 4294967280  ;;  %p19_p12 = scmp.ge.s32.totalorder %s903_s30, 4   ;;  %s1064_s24 = smov %s823_s25 }
 0x1e8   : > { %s1065_s25 = smov %s827_s26  ;;  %s1066_s26 = smov %s914_s10 }
 0x1e9   : > { %s1067_s27 = smov %s903_s30  ;;  %21 = sbr.rel (!%p19_p12) target bundleno = 5 (0x5), region = 94 }
 0x1ee   :  { %566 = vsyncpa [#allocation4], 1 }
 0x1ef   :  { %568 = vsyncpa [#allocation4 + $0x1], 1 }
 0x1f0   :  { %569 = vsyncpa [#allocation7], 1 }
 0x1f1   :  { %570 = vsyncpa [#allocation5], 1 }
 0x1f2   :  { %572 = vsyncpa [#allocation5 + $0x1], 1 }

</bundles_post_ra>
